<compile_context>
chip_gen: v6e
topology: v6e:2x2x1
jax: 0.10.0
libtpu: 0.0.40
codegen_flags: <defaults>
</compile_context>

<pallas_src>
import jax
import jax.numpy as jnp
from jax.experimental import pallas as pl
from jax.experimental.pallas import tpu as pltpu


def _pref_kernel(x_ref, y_ref, w1_ref, b1_ref, w2_ref, b2_ref, w3r_ref, b3_ref,
                 ox_ref, oy_ref):
    # Weights: w1/w2 arrive already in bf16 (cast once in the wrapper);
    # biases / final-layer row stay f32.
    w1 = w1_ref[...]              # (D, 128)  bf16
    b1 = b1_ref[...]              # (1, 128)  f32
    w2 = w2_ref[...]              # (128, 64) bf16
    b2 = b2_ref[...]              # (1, 64)   f32
    w3r = w3r_ref[...]            # (1, 64)   f32  (transposed final weight)
    b3 = b3_ref[...]              # (1, 1)    f32

    def net(a):                   # a: (tb, D) bf16 block
        # MXU: bf16 operands, f32 accumulation.
        h1 = jnp.dot(a, w1, preferred_element_type=jnp.float32) + b1
        h1 = jnp.maximum(h1, 0.0)
        h2 = jnp.dot(h1.astype(jnp.bfloat16), w2,
                     preferred_element_type=jnp.float32) + b2
        h2 = jnp.maximum(h2, 0.0)
        # 1-wide final layer on VPU + XLU (cross-lane sum), not the MXU.
        return jnp.sum(h2 * w3r, axis=-1, keepdims=True) + b3

    ox_ref[...] = net(x_ref[...]).astype(ox_ref.dtype)
    oy_ref[...] = net(y_ref[...]).astype(oy_ref.dtype)


def _round_up(v, m):
    return ((v + m - 1) // m) * m


def preference_model_forward(x, y, params, *, tile_b=4096):
    """Equivalent of PreferenceModel.forward(x, y) -> (utility_x, utility_y).

    Note: inputs / hidden activations are fed to the MXU in bf16 (f32
    accumulation), so results match the f32 PyTorch reference to ~1e-2
    relative level.  Wrap this function in jax.jit so the bf16 casts fuse
    with the producers instead of adding an extra HBM pass.
    """
    w1, b1, w2, b2, w3, b3 = params
    n, d = x.shape
    assert y.shape == (n, d)
    assert tile_b % 128 == 0, "tile_b must be a multiple of 128"

    h1_dim, h2_dim = w1.shape[1], w2.shape[1]

    # Stream activations as bf16 (halves HBM read traffic; MXU downcast anyway).
    xb = x if x.dtype == jnp.bfloat16 else x.astype(jnp.bfloat16)
    yb = y if y.dtype == jnp.bfloat16 else y.astype(jnp.bfloat16)

    # One-off weight prep (tiny; fuses/hoists under jit).
    w1_bf = w1.astype(jnp.bfloat16)
    w2_bf = w2.astype(jnp.bfloat16)
    b1r = b1.reshape(1, h1_dim).astype(jnp.float32)
    b2r = b2.reshape(1, h2_dim).astype(jnp.float32)
    w3_row = w3.reshape(1, h2_dim).astype(jnp.float32)
    b3r = b3.reshape(1, 1).astype(jnp.float32)

    # Batch-tile selection:
    #   * tiny batches: single tile equal to the full batch dim (always legal),
    #   * otherwise: multiple-of-128 tile, capped at tile_b, and sized so the
    #     grid has >= 2 steps (lets v7x shard the "parallel" axis over 2 TCs).
    if n <= 128:
        tb = n
    else:
        tb = min(tile_b, _round_up(pl.cdiv(n, 2), 128))
    grid = (pl.cdiv(n, tb),)

    data_spec = pl.BlockSpec((tb, d), lambda i: (i, 0))
    out_spec = pl.BlockSpec((tb, 1), lambda i: (i, 0))

    def resident(shape):
        # Constant index_map -> block stays VMEM-resident across iterations.
        return pl.BlockSpec(shape, lambda i, _nd=len(shape): (0,) * _nd)

    flops = 2 * 2 * n * (d * h1_dim + h1_dim * h2_dim + h2_dim)
    bytes_accessed = (
        2 * 2 * n * d                       # bf16 x and y reads
        + 4 * 2 * n * 1                     # f32 utility writes
        + 2 * (w1.size + w2.size)           # bf16 weights
        + 4 * (b1.size + b2.size + w3.size + b3.size))
    cost = pl.CostEstimate(flops=flops, transcendentals=0,
                           bytes_accessed=bytes_accessed)

    ux, uy = pl.pallas_call(
        _pref_kernel,
        out_shape=(jax.ShapeDtypeStruct((n, 1), jnp.float32),
                   jax.ShapeDtypeStruct((n, 1), jnp.float32)),
        grid=grid,
        in_specs=[
            data_spec, data_spec,
            resident(w1_bf.shape), resident(b1r.shape),
            resident(w2_bf.shape), resident(b2r.shape),
            resident(w3_row.shape), resident(b3r.shape),
        ],
        out_specs=(out_spec, out_spec),
        compiler_params=pltpu.CompilerParams(
            dimension_semantics=("parallel",),
            vmem_limit_bytes=32 * 1024 * 1024),
        cost_estimate=cost,
    )(xb, yb, w1_bf, b1r, w2_bf, b2r, w3_row, b3r)
    return ux, uy


def init_params(input_dim, key):
    """Deterministic init mimicking PyTorch nn.Linear default U(-1/sqrt(fan_in), +)."""
    def linear(key, fan_in, fan_out):
        k_w, k_b = jax.random.split(key)
        bound = 1.0 / jnp.sqrt(fan_in)
        # stored as [in, out] so the kernel computes x @ W + b
        w = jax.random.uniform(k_w, (fan_in, fan_out), jnp.float32, -bound, bound)
        b = jax.random.uniform(k_b, (1, fan_out), jnp.float32, -bound, bound)
        return w, b

    k1, k2, k3 = jax.random.split(key, 3)
    w1, b1 = linear(k1, input_dim, 128)
    w2, b2 = linear(k2, 128, 64)
    w3, b3 = linear(k3, 64, 1)
    return (w1, b1, w2, b2, w3, b3)


def _reference(x, y, params):
    w1, b1, w2, b2, w3, b3 = params

    def net(a):
        h = jnp.maximum(a @ w1 + b1, 0.0)
        h = jnp.maximum(h @ w2 + b2, 0.0)
        return h @ w3 + b3

    return net(x), net(y)


if __name__ == "__main__":
    key = jax.random.PRNGKey(0)
    k_p, k_x, k_y = jax.random.split(key, 3)

    input_dim = 32
    batch = 2

    params = init_params(input_dim, k_p)
    x = jax.random.normal(k_x, (batch, input_dim), jnp.float32)
    y = jax.random.normal(k_y, (batch, input_dim), jnp.float32)

    fwd = jax.jit(preference_model_forward)
    ux, uy = fwd(x, y, params)
    jax.block_until_ready((ux, uy))

    # Sanity-check against plain-JAX f32 reference (tolerance loosened for the
    # bf16 MXU input path; accumulation is still f32).
    rx, ry = _reference(x, y, params)
    assert ux.shape == (batch, 1) and uy.shape == (batch, 1)
    assert jnp.allclose(ux, rx, atol=5e-2, rtol=5e-2)
    assert jnp.allclose(uy, ry, atol=5e-2, rtol=5e-2)

    print("KERNEL_OK")
</pallas_src>

<mosaic_0001>
module attributes {stable_mosaic.version = 11 : i64} {
  func.func @_pref_kernel(%arg0: i32, %arg1: memref<2x32xbf16, #tpu.memory_space<vmem>>, %arg2: memref<2x32xbf16, #tpu.memory_space<vmem>>, %arg3: memref<32x128xbf16, #tpu.memory_space<vmem>>, %arg4: memref<1x128xf32, #tpu.memory_space<vmem>>, %arg5: memref<128x64xbf16, #tpu.memory_space<vmem>>, %arg6: memref<1x64xf32, #tpu.memory_space<vmem>>, %arg7: memref<1x64xf32, #tpu.memory_space<vmem>>, %arg8: memref<1x1xf32, #tpu.memory_space<vmem>>, %arg9: memref<2x1xf32, #tpu.memory_space<vmem>>, %arg10: memref<2x1xf32, #tpu.memory_space<vmem>>) attributes {dimension_semantics = [#tpu.dimension_semantics<parallel>], iteration_bounds = array<i64: 1>, scalar_prefetch = 0 : i64, scratch_operands = 0 : i64, tpu.core_type = #tpu.core_type<tc>, window_params = [{transform_indices = @transform_0, window_bounds = array<i64: 2, 32>}, {transform_indices = @transform_1, window_bounds = array<i64: 2, 32>}, {pipeline_mode = #tpu.pipeline_mode<synchronous>, transform_indices = @transform_2, window_bounds = array<i64: 32, 128>}, {pipeline_mode = #tpu.pipeline_mode<synchronous>, transform_indices = @transform_3, window_bounds = array<i64: 1, 128>}, {pipeline_mode = #tpu.pipeline_mode<synchronous>, transform_indices = @transform_4, window_bounds = array<i64: 128, 64>}, {pipeline_mode = #tpu.pipeline_mode<synchronous>, transform_indices = @transform_5, window_bounds = array<i64: 1, 64>}, {pipeline_mode = #tpu.pipeline_mode<synchronous>, transform_indices = @transform_6, window_bounds = array<i64: 1, 64>}, {pipeline_mode = #tpu.pipeline_mode<synchronous>, transform_indices = @transform_7, window_bounds = array<i64: 1, 1>}, {transform_indices = @transform_8, window_bounds = array<i64: 2, 1>}, {transform_indices = @transform_9, window_bounds = array<i64: 2, 1>}]} {
    %c0 = arith.constant 0 : index
    %c0_0 = arith.constant 0 : index
    %0 = vector.load %arg3[%c0, %c0_0] : memref<32x128xbf16, #tpu.memory_space<vmem>>, vector<32x128xbf16>
    %c0_1 = arith.constant 0 : index
    %c0_2 = arith.constant 0 : index
    %1 = vector.load %arg4[%c0_1, %c0_2] : memref<1x128xf32, #tpu.memory_space<vmem>>, vector<1x128xf32>
    %c0_3 = arith.constant 0 : index
    %c0_4 = arith.constant 0 : index
    %2 = vector.load %arg5[%c0_3, %c0_4] : memref<128x64xbf16, #tpu.memory_space<vmem>>, vector<128x64xbf16>
    %c0_5 = arith.constant 0 : index
    %c0_6 = arith.constant 0 : index
    %3 = vector.load %arg6[%c0_5, %c0_6] : memref<1x64xf32, #tpu.memory_space<vmem>>, vector<1x64xf32>
    %c0_7 = arith.constant 0 : index
    %c0_8 = arith.constant 0 : index
    %4 = vector.load %arg7[%c0_7, %c0_8] : memref<1x64xf32, #tpu.memory_space<vmem>>, vector<1x64xf32>
    %c0_9 = arith.constant 0 : index
    %c0_10 = arith.constant 0 : index
    %5 = vector.load %arg8[%c0_9, %c0_10] : memref<1x1xf32, #tpu.memory_space<vmem>>, vector<1x1xf32>
    %c0_11 = arith.constant 0 : index
    %c0_12 = arith.constant 0 : index
    %6 = vector.load %arg1[%c0_11, %c0_12] : memref<2x32xbf16, #tpu.memory_space<vmem>>, vector<2x32xbf16>
    %cst = arith.constant dense<0.000000e+00> : vector<2x128xf32>
    %7 = tpu.matmul %6, %0, %cst {dimension_numbers = #tpu.dot_dimension_numbers<[1], [0], [0], [1], [0, 0, 1, 1], [], []>} : vector<2x32xbf16>, vector<32x128xbf16>, vector<2x128xf32> -> vector<2x128xf32>
    %8 = vector.broadcast %1 : vector<1x128xf32> to vector<2x128xf32>
    %9 = arith.addf %7, %8 : vector<2x128xf32>
    %cst_13 = arith.constant 0.000000e+00 : f32
    %10 = vector.broadcast %cst_13 : f32 to vector<2x128xf32>
    %11 = arith.maximumf %9, %10 : vector<2x128xf32>
    %12 = arith.truncf %11 : vector<2x128xf32> to vector<2x128xbf16>
    %cst_14 = arith.constant dense<0.000000e+00> : vector<2x64xf32>
    %13 = tpu.matmul %12, %2, %cst_14 {dimension_numbers = #tpu.dot_dimension_numbers<[1], [0], [0], [1], [0, 0, 1, 1], [], []>} : vector<2x128xbf16>, vector<128x64xbf16>, vector<2x64xf32> -> vector<2x64xf32>
    %14 = vector.broadcast %3 : vector<1x64xf32> to vector<2x64xf32>
    %15 = arith.addf %13, %14 : vector<2x64xf32>
    %cst_15 = arith.constant 0.000000e+00 : f32
    %16 = vector.broadcast %cst_15 : f32 to vector<2x64xf32>
    %17 = arith.maximumf %15, %16 : vector<2x64xf32>
    %18 = vector.broadcast %4 : vector<1x64xf32> to vector<2x64xf32>
    %19 = arith.mulf %17, %18 : vector<2x64xf32>
    %cst_16 = arith.constant dense<0.000000e+00> : vector<2xf32>
    %20 = vector.multi_reduction <add>, %19, %cst_16 [1] : vector<2x64xf32> to vector<2xf32>
    %21 = vector.shape_cast %20 : vector<2xf32> to vector<2x1xf32>
    %22 = vector.broadcast %5 : vector<1x1xf32> to vector<2x1xf32>
    %23 = arith.addf %21, %22 : vector<2x1xf32>
    %c0_17 = arith.constant 0 : index
    %c0_18 = arith.constant 0 : index
    %24 = vector.load %arg9[%c0_17, %c0_18] : memref<2x1xf32, #tpu.memory_space<vmem>>, vector<2x1xf32>
    tpu.vector_store %arg9[%c0_17, %c0_18], %23 {strides = array<i32>} : memref<2x1xf32, #tpu.memory_space<vmem>>, vector<2x1xf32>,
    %c0_19 = arith.constant 0 : index
    %c0_20 = arith.constant 0 : index
    %25 = vector.load %arg2[%c0_19, %c0_20] : memref<2x32xbf16, #tpu.memory_space<vmem>>, vector<2x32xbf16>
    %cst_21 = arith.constant dense<0.000000e+00> : vector<2x128xf32>
    %26 = tpu.matmul %25, %0, %cst_21 {dimension_numbers = #tpu.dot_dimension_numbers<[1], [0], [0], [1], [0, 0, 1, 1], [], []>} : vector<2x32xbf16>, vector<32x128xbf16>, vector<2x128xf32> -> vector<2x128xf32>
    %27 = vector.broadcast %1 : vector<1x128xf32> to vector<2x128xf32>
    %28 = arith.addf %26, %27 : vector<2x128xf32>
    %cst_22 = arith.constant 0.000000e+00 : f32
    %29 = vector.broadcast %cst_22 : f32 to vector<2x128xf32>
    %30 = arith.maximumf %28, %29 : vector<2x128xf32>
    %31 = arith.truncf %30 : vector<2x128xf32> to vector<2x128xbf16>
    %cst_23 = arith.constant dense<0.000000e+00> : vector<2x64xf32>
    %32 = tpu.matmul %31, %2, %cst_23 {dimension_numbers = #tpu.dot_dimension_numbers<[1], [0], [0], [1], [0, 0, 1, 1], [], []>} : vector<2x128xbf16>, vector<128x64xbf16>, vector<2x64xf32> -> vector<2x64xf32>
    %33 = vector.broadcast %3 : vector<1x64xf32> to vector<2x64xf32>
    %34 = arith.addf %32, %33 : vector<2x64xf32>
    %cst_24 = arith.constant 0.000000e+00 : f32
    %35 = vector.broadcast %cst_24 : f32 to vector<2x64xf32>
    %36 = arith.maximumf %34, %35 : vector<2x64xf32>
    %37 = vector.broadcast %4 : vector<1x64xf32> to vector<2x64xf32>
    %38 = arith.mulf %36, %37 : vector<2x64xf32>
    %cst_25 = arith.constant dense<0.000000e+00> : vector<2xf32>
    %39 = vector.multi_reduction <add>, %38, %cst_25 [1] : vector<2x64xf32> to vector<2xf32>
    %40 = vector.shape_cast %39 : vector<2xf32> to vector<2x1xf32>
    %41 = vector.broadcast %5 : vector<1x1xf32> to vector<2x1xf32>
    %42 = arith.addf %40, %41 : vector<2x1xf32>
    %c0_26 = arith.constant 0 : index
    %c0_27 = arith.constant 0 : index
    %43 = vector.load %arg10[%c0_26, %c0_27] : memref<2x1xf32, #tpu.memory_space<vmem>>, vector<2x1xf32>
    tpu.vector_store %arg10[%c0_26, %c0_27], %42 {strides = array<i32>} : memref<2x1xf32, #tpu.memory_space<vmem>>, vector<2x1xf32>,
    return
  }
  func.func @transform_0(%arg0: i32) -> (i32, i32) {
    %c0_i32 = arith.constant 0 : i32
    %c0_i32_0 = arith.constant 0 : i32
    return %arg0, %c0_i32 : i32, i32
  }
  func.func @transform_1(%arg0: i32) -> (i32, i32) {
    %c0_i32 = arith.constant 0 : i32
    %c0_i32_0 = arith.constant 0 : i32
    return %arg0, %c0_i32 : i32, i32
  }
  func.func @transform_2(%arg0: i32) -> (i32, i32) {
    %c0_i32 = arith.constant 0 : i32
    %c0_i32_0 = arith.constant 0 : i32
    %c0_i32_1 = arith.constant 0 : i32
    return %c0_i32, %c0_i32_0 : i32, i32
  }
  func.func @transform_3(%arg0: i32) -> (i32, i32) {
    %c0_i32 = arith.constant 0 : i32
    %c0_i32_0 = arith.constant 0 : i32
    %c0_i32_1 = arith.constant 0 : i32
    return %c0_i32, %c0_i32_0 : i32, i32
  }
  func.func @transform_4(%arg0: i32) -> (i32, i32) {
    %c0_i32 = arith.constant 0 : i32
    %c0_i32_0 = arith.constant 0 : i32
    %c0_i32_1 = arith.constant 0 : i32
    return %c0_i32, %c0_i32_0 : i32, i32
  }
  func.func @transform_5(%arg0: i32) -> (i32, i32) {
    %c0_i32 = arith.constant 0 : i32
    %c0_i32_0 = arith.constant 0 : i32
    %c0_i32_1 = arith.constant 0 : i32
    return %c0_i32, %c0_i32_0 : i32, i32
  }
  func.func @transform_6(%arg0: i32) -> (i32, i32) {
    %c0_i32 = arith.constant 0 : i32
    %c0_i32_0 = arith.constant 0 : i32
    %c0_i32_1 = arith.constant 0 : i32
    return %c0_i32, %c0_i32_0 : i32, i32
  }
  func.func @transform_7(%arg0: i32) -> (i32, i32) {
    %c0_i32 = arith.constant 0 : i32
    %c0_i32_0 = arith.constant 0 : i32
    %c0_i32_1 = arith.constant 0 : i32
    return %c0_i32, %c0_i32_0 : i32, i32
  }
  func.func @transform_8(%arg0: i32) -> (i32, i32) {
    %c0_i32 = arith.constant 0 : i32
    %c0_i32_0 = arith.constant 0 : i32
    return %arg0, %c0_i32 : i32, i32
  }
  func.func @transform_9(%arg0: i32) -> (i32, i32) {
    %c0_i32 = arith.constant 0 : i32
    %c0_i32_0 = arith.constant 0 : i32
    return %arg0, %c0_i32 : i32, i32
  }
}

</mosaic_0001>

<bundles_post_ra>
// kernel: preference_model_forward.1
= control target key start
LH: loop header
LB: loop body
LE: loop exit
PB: predicated region body
PF: predicated region fallthrough
CT: control target
= control target key end

     0   :  { %v447_v0 = vmov 0.0   ;;  %vm448_vm0 = vmmov 0   ;;  %vm77_vm1 = vcmask 261120   ;;  %vm225_vm2 = vcmask 517120   ;;  %s557_s2 = inlined_call_operand.vmem [shape: bf16[32,128], index: 2, kind: input, shape index: {}]   ;;  %s558_s0 = inlined_call_operand.vmem [shape: bf16[2,32], index: 0, kind: input, shape index: {}]   ;;  %s559_s4 = inlined_call_operand.vmem [shape: bf16[128,64], index: 4, kind: input, shape index: {}]   ;;  %s560_s1 = inlined_call_operand.vmem [shape: bf16[2,32], index: 1, kind: input, shape index: {}]   ;;  %s561_s3 = inlined_call_operand.vmem [shape: f32[1,128], index: 3, kind: input, shape index: {}]   ;;  %s562_s7 = inlined_call_operand.<no memory space> [shape: f32[1,1], index: 7, kind: input, shape index: {}]   ;;  %s563_s5 = inlined_call_operand.vmem [shape: f32[1,64], index: 5, kind: input, shape index: {}]   ;;  %s564_s6 = inlined_call_operand.vmem [shape: f32[1,64], index: 6, kind: input, shape index: {}]   ;;  %s565_s8 = inlined_call_operand.vmem [shape: f32[2,1], index: 8, kind: output, shape index: {0}]   ;;  %s566_s9 = inlined_call_operand.vmem [shape: f32[2,1], index: 9, kind: output, shape index: {1}]  }
   0x1   :  { %379 = vmatprep.subr.bf16.mxu1 %v447_v0  ;;  %407 = vmatprep.subr.bf16.mxu0 %v447_v0  ;;  %v437_v1 = vld [vmem:[%s557_s2 + $0x8] sm:$0xff]   ;;  %v438_v2 = vld [vmem:[%s557_s2] sm:$0xff]   ;;  %v439_v5 = vld [vmem:[%s559_s4 + $0x38] sm:$0xff]   ;;  %v15_v28 = vstv %s562_s7  ;;  %vm236_vm3 = vcmask 1024  }
   0x2   :  { %383 = vmatprep.mubr.msk.bf16.mxu1 %vm448_vm0, %v447_v0  ;;  %411 = vmatprep.mubr.msk.bf16.mxu0 %vm448_vm0, %v447_v0  ;;  %v58_v3 = vld [vmem:[%s558_s0] sm:$0x1]  ;;  %v440_v6 = vld [vmem:[%s559_s4 + $0x30] sm:$0xff]   ;;  %v441_v7 = vld [vmem:[%s559_s4 + $0x28] sm:$0xff]   ;;  %16 = vst [vmem:[#allocation2] sm:$0x1] %v15_v28 }
   0x3   :  { %380 = vmatpush3.bf16.msra.mxu1 %v437_v1  ;;  %408 = vmatpush3.bf16.msra.mxu0 %v437_v1  ;;  %v238_v4 = vld [vmem:[%s560_s1] sm:$0x1]  ;;  %v443_v9 = vld [vmem:[%s559_s4 + $0x18] sm:$0xff]   ;;  %v444_v10 = vld [vmem:[%s559_s4 + $0x10] sm:$0xff]  }
   0x4   :  { %381 = vmatprep.subr.bf16.mxu1 %v447_v0  ;;  %409 = vmatprep.subr.bf16.mxu0 %v447_v0  ;;  %v442_v8 = vld [vmem:[%s559_s4 + $0x20] sm:$0xff]   ;;  %v445_v11 = vld [vmem:[%s559_s4 + $0x8] sm:$0xff]  }
   0x5   :  { %v446_v12 = vld [vmem:[%s559_s4] sm:$0xff]  }
   0x6   :  { %v339_v13 = vld [vmem:[%s561_s3] ss:$0 sm:$0xff] }
   0x7   :  { %382 = vmatpush3.bf16.msra.mxu1 %v438_v2  ;;  %410 = vmatpush3.bf16.msra.mxu0 %v438_v2  ;;  %v343_v29 = vld [vmem:[%s563_s5] ss:$0 sm:$0xff] }
   0x8   :  { %387 = vmatprep.subr.bf16.mxu1 %v447_v0  ;;  %415 = vmatprep.subr.bf16.mxu0 %v447_v0  ;;  %v352_v36 = vld [vmem:[%s564_s6] ss:$0 sm:$0xff] }
   0x9   :  { %v353_v47 = vld [vmem:[#allocation2] ss:$0 sm:$0xff] }
   0xa   :  { %384 = vmatmul.mubr.msk.bf16.vlgmr.msra.gmra.mxu1 %vm77_vm1, %v58_v3  ;;  %412 = vmatmul.mubr.msk.bf16.vlgmr.msra.gmra.mxu0 %vm77_vm1, %v238_v4 }
   0xb   :  { %388 = vmatpush3.bf16.msra.mxu1 %v439_v5  ;;  %416 = vmatpush3.bf16.msra.mxu0 %v439_v5 }
   0xc   :  { %389 = vmatprep.subr.bf16.mxu1 %v447_v0  ;;  %417 = vmatprep.subr.bf16.mxu0 %v447_v0 }
   0xd   :  { %403 = vmatprep.mubr.msk.bf16.mxu1 %vm448_vm0, %v447_v0  ;;  %431 = vmatprep.mubr.msk.bf16.mxu0 %vm448_vm0, %v447_v0 }
   0xf   :  { %390 = vmatpush3.bf16.msra.mxu1 %v440_v6  ;;  %418 = vmatpush3.bf16.msra.mxu0 %v440_v6 }
  0x10   :  { %391 = vmatprep.subr.bf16.mxu1 %v447_v0  ;;  %419 = vmatprep.subr.bf16.mxu0 %v447_v0 }
  0x13   :  { %392 = vmatpush3.bf16.msra.mxu1 %v441_v7  ;;  %420 = vmatpush3.bf16.msra.mxu0 %v441_v7 }
  0x14   :  { %393 = vmatprep.subr.bf16.mxu1 %v447_v0  ;;  %421 = vmatprep.subr.bf16.mxu0 %v447_v0 }
  0x17   :  { %394 = vmatpush3.bf16.msra.mxu1 %v442_v8  ;;  %422 = vmatpush3.bf16.msra.mxu0 %v442_v8 }
  0x18   :  { %395 = vmatprep.subr.bf16.mxu1 %v447_v0  ;;  %423 = vmatprep.subr.bf16.mxu0 %v447_v0 }
  0x1b   :  { %396 = vmatpush3.bf16.msra.mxu1 %v443_v9  ;;  %424 = vmatpush3.bf16.msra.mxu0 %v443_v9 }
  0x1c   :  { %397 = vmatprep.subr.bf16.mxu1 %v447_v0  ;;  %425 = vmatprep.subr.bf16.mxu0 %v447_v0 }
  0x1f   :  { %398 = vmatpush3.bf16.msra.mxu1 %v444_v10  ;;  %426 = vmatpush3.bf16.msra.mxu0 %v444_v10 }
  0x20   :  { %399 = vmatprep.subr.bf16.mxu1 %v447_v0  ;;  %427 = vmatprep.subr.bf16.mxu0 %v447_v0 }
  0x23   :  { %400 = vmatpush3.bf16.msra.mxu1 %v445_v11  ;;  %428 = vmatpush3.bf16.msra.mxu0 %v445_v11 }
  0x24   :  { %401 = vmatprep.subr.bf16.mxu1 %v447_v0  ;;  %429 = vmatprep.subr.bf16.mxu0 %v447_v0 }
  0x27   :  { %402 = vmatpush3.bf16.msra.mxu1 %v446_v12  ;;  %430 = vmatpush3.bf16.msra.mxu0 %v446_v12 }
  0xca   :  { %v115_v14 = vpop.f32.mrf.mxu1  ;;  %v276_v15 = vpop.f32.mrf.mxu0 }
  0xcb   :  { %v116_v16 = vadd.f32 %v339_v13, %v115_v14  ;;  %v277_v17 = vadd.f32 %v339_v13, %v276_v15 }
  0xcc   :  { %v385_v18 = vpop.f32.mrf.mxu1  ;;  %v413_v19 = vpop.f32.mrf.mxu0 }
  0xcd   :  { %v121_v20 = vmax.f32 %v116_v16, 0.0  ;;  %v282_v21 = vmax.f32 %v277_v17, 0.0 }
  0xce   :  { %v118_v22 = vpop.f32.mrf.mxu1  ;;  %v279_v23 = vpop.f32.mrf.mxu0 }
  0xcf   :  { %v122_v24 = vpack.c.bf16 %v121_v20, %v121_v20  ;;  %v283_v25 = vpack.c.bf16 %v282_v21, %v282_v21 }
  0xd0   :  { %v386_v26 = vpop.f32.mrf.mxu1  ;;  %v414_v27 = vpop.f32.mrf.mxu0 }
  0xd1   :  { %404 = vmatmul.mubr.bf16.vlgmr.msra.gmra.mxu1 %v122_v24  ;;  %432 = vmatmul.mubr.bf16.vlgmr.msra.gmra.mxu0 %v283_v25 }
 0x191   :  { %v211_v30 = vpop.f32.mrf.mxu1  ;;  %v318_v31 = vpop.f32.mrf.mxu0 }
 0x192   :  { %v212_v32 = vadd.f32 %v343_v29, %v211_v30  ;;  %v319_v33 = vadd.f32 %v343_v29, %v318_v31 }
 0x193   :  { %v405_v34 = vpop.f32.mrf.mxu1  ;;  %v433_v35 = vpop.f32.mrf.mxu0 }
 0x194   :  { %v217_v37 = vmax.f32 %v212_v32, 0.0  ;;  %v324_v38 = vmax.f32 %v319_v33, 0.0 }
 0x195   :  { %v214_v39 = vpop.f32.mrf.mxu1  ;;  %v321_v40 = vpop.f32.mrf.mxu0 }
 0x196   :  { %v224_v41 = vmul.f32 %v352_v36, %v217_v37  ;;  %v325_v42 = vmul.f32 %v352_v36, %v324_v38 }
 0x197   :  { %v406_v43 = vpop.f32.mrf.mxu1  ;;  %v434_v44 = vpop.f32.mrf.mxu0 }
 0x198   :  { %v226_v45 = vsel %vm225_vm2, %v224_v41, 0.0  ;;  %v326_v46 = vsel %vm225_vm2, %v325_v42, 0.0 }
 0x199   :  { %227 = vadd.xlane.f32.xlu0 %v226_v45 }
 0x19d   :  { %327 = vadd.xlane.f32.xlu0 %v326_v46 }
 0x222   :  { %v228_v48 = vpop.xlane.xlu0 %227 }
 0x223   :  { %v235_v49 = vadd.f32 %v353_v47, %v228_v48 }
 0x225   :  { %237 = vst.msk [vmem:[%s565_s8] sm:$0x3] %vm236_vm3, %v235_v49 }
 0x226   :  { %v328_v50 = vpop.xlane.xlu0 %327 }
 0x227   :  { %v329_v51 = vadd.f32 %v353_v47, %v328_v50 }
 0x229   :  { %330 = vst.msk [vmem:[%s566_s9] sm:$0x3] %vm236_vm3, %v329_v51 }

</bundles_post_ra>
